<compile_context>
chip_gen: v7x
topology: tpu7x:2x2x1
jax: 0.10.0
libtpu: 0.0.40
codegen_flags: <defaults>
</compile_context>

<pallas_src>
import math

import numpy as np
import jax
import jax.numpy as jnp
from jax.experimental import pallas as pl
from jax.experimental.pallas import tpu as pltpu  # noqa: F401  (kept for completeness)

# ----------------------------------------------------------------------------
# Configuration (exercises all three modulator types).
# ----------------------------------------------------------------------------
CONFIG = dict(
    encoder_modulator="CLADE",
    middle_modulator="SPADE",
    decoder_modulator="INADE",
    feature_sizes_enc=[(32, 16, 16), (32, 8, 8)],   # (num_features, H, W)
    feature_sizes_mid=[(32, 8, 8)],
    feature_sizes_dec=[(32, 8, 8), (32, 16, 16)],
    semantic_nc=4,
    nhidden=32,        # SPADE hidden width
    z_channels=8,      # INADE noise channels
)

LRELU_GAIN = float(math.sqrt(2.0))
LRELU_SLOPE = 0.2
_HI = jax.lax.Precision.HIGHEST


# ----------------------------------------------------------------------------
# Small plain-JAX / numpy helpers (no transposes anywhere).
# ----------------------------------------------------------------------------
def nearest_resize_nchw(x, out_h, out_w):
    """torch F.interpolate(mode='nearest') on NCHW.  Identity / strided slice here."""
    N, C, H, W = x.shape
    if (H, W) == (out_h, out_w):
        return x
    if H % out_h == 0 and W % out_w == 0:
        return x[:, :, :: H // out_h, :: W // out_w]
    rows = (jnp.arange(out_h) * H // out_h).astype(jnp.int32)
    cols = (jnp.arange(out_w) * W // out_w).astype(jnp.int32)
    return x[:, :, rows[:, None], cols[None, :]]


def make_shift_matrices(H, W):
    """S[t] is (H*W, H*W) 0/1 with (seg @ S[t])[c, (y,x)] = seg[c, (y+dy-1, x+dx-1)]
    (zero outside the image), t = dy*3 + dx.  Drives the in-kernel 3x3 conv."""
    P = H * W
    S = np.zeros((9, P, P), np.float32)
    for dy in range(3):
        for dx in range(3):
            t = dy * 3 + dx
            oy, ox = dy - 1, dx - 1
            for y in range(H):
                yy = y + oy
                if not 0 <= yy < H:
                    continue
                for x in range(W):
                    xx = x + ox
                    if not 0 <= xx < W:
                        continue
                    S[t, yy * W + xx, y * W + x] = 1.0
    return jnp.asarray(S)


def _flatten_hw(seg_nchw):
    N, C, H, W = seg_nchw.shape
    return seg_nchw.reshape(N, C, H * W)   # free, stays channel-major


# ----------------------------------------------------------------------------
# Fused per-group Pallas calls (one launch per modulator group, no grid).
# ----------------------------------------------------------------------------
def clade_group(layers, segs_nchw):
    N = segs_nchw[0].shape[0]
    L = len(layers)
    nfs = [l["nf"] for l in layers]
    shapes = [s.shape for s in segs_nchw]
    seg_flat = [_flatten_hw(s) for s in segs_nchw]
    Ps = [sf.shape[-1] for sf in seg_flat]

    def kernel(*refs):
        seg_refs, w_refs, out_refs = refs[:L], refs[L:2 * L], refs[2 * L:]
        for li in range(L):
            nf = nfs[li]
            w = w_refs[li][...]                                   # (2*nf, C) packed gamma|beta
            for n in range(N):
                actv = jnp.dot(w, seg_refs[li][n],
                               preferred_element_type=jnp.float32)   # (2*nf, P)
                out_refs[2 * li][n] = actv[:nf] + 1.0                 # aligned sublane slice
                out_refs[2 * li + 1][n] = actv[nf:]

    out_shape = tuple(jax.ShapeDtypeStruct((N, nfs[li], Ps[li]), jnp.float32)
                      for li in range(L) for _ in range(2))
    outs = pl.pallas_call(kernel, out_shape=out_shape)(
        *seg_flat, *[l["w"] for l in layers])

    res = []
    for li in range(L):
        _, _, H, W = shapes[li]
        res.append((outs[2 * li].reshape(N, nfs[li], H, W),
                    outs[2 * li + 1].reshape(N, nfs[li], H, W)))
    return res


def spade_group(layers, segs_nchw):
    N = segs_nchw[0].shape[0]
    L = len(layers)
    nfs = [l["nf"] for l in layers]
    nhs = [l["nh"] for l in layers]
    shapes = [s.shape for s in segs_nchw]
    seg_flat = [_flatten_hw(s) for s in segs_nchw]
    Ps = [sf.shape[-1] for sf in seg_flat]
    for l, s in zip(layers, segs_nchw):
        assert l["hw"] == (s.shape[2], s.shape[3])

    def kernel(*refs):
        seg_refs = refs[0 * L:1 * L]
        shift_refs = refs[1 * L:2 * L]
        w1_refs = refs[2 * L:3 * L]
        b1_refs = refs[3 * L:4 * L]
        w2_refs = refs[4 * L:5 * L]
        b2_refs = refs[5 * L:6 * L]
        out_refs = refs[6 * L:]
        for li in range(L):
            nf, nh, P = nfs[li], nhs[li], Ps[li]
            w2 = w2_refs[li][...]          # (2*nf, nh)
            b2p = b2_refs[li][...]         # (2*nf, 1)  (conv bias + [1]*nf|[0]*nf folded)
            b1 = b1_refs[li][...]          # (nh, 1)
            for n in range(N):
                seg = seg_refs[li][n]                                  # (C, P)
                acc = jnp.zeros((nh, P), jnp.float32)
                for t in range(9):                                     # in-kernel 3x3 conv
                    shifted = jnp.dot(seg, shift_refs[li][t],
                                      preferred_element_type=jnp.float32)   # zero-padded shift
                    acc = acc + jnp.dot(w1_refs[li][t], shifted,
                                        preferred_element_type=jnp.float32)
                h = acc + b1
                h = jnp.where(h >= 0.0, h, LRELU_SLOPE * h) * LRELU_GAIN
                actv = jnp.dot(w2, h, preferred_element_type=jnp.float32) + b2p
                out_refs[2 * li][n] = actv[:nf]        # "+1" already folded into b2p
                out_refs[2 * li + 1][n] = actv[nf:]

    out_shape = tuple(jax.ShapeDtypeStruct((N, nfs[li], Ps[li]), jnp.float32)
                      for li in range(L) for _ in range(2))
    args = (list(seg_flat)
            + [l["shift"] for l in layers] + [l["w1"] for l in layers]
            + [l["b1"] for l in layers] + [l["w2"] for l in layers]
            + [l["b2p"] for l in layers])
    outs = pl.pallas_call(kernel, out_shape=out_shape)(*args)

    res = []
    for li in range(L):
        _, _, H, W = shapes[li]
        res.append((outs[2 * li].reshape(N, nfs[li], H, W),
                    outs[2 * li + 1].reshape(N, nfs[li], H, W)))
    return res


def inade_group(layers, segs_nchw, z):
    N = segs_nchw[0].shape[0]
    L = len(layers)
    nfs = [l["nf"] for l in layers]
    shapes = [s.shape for s in segs_nchw]
    seg_flat = [_flatten_hw(s) for s in segs_nchw]
    Ps = [sf.shape[-1] for sf in seg_flat]
    zt = jnp.swapaxes(z, 1, 2)            # (N, z_channels, semantic_nc) == torch permute(0,2,1)

    def kernel(*refs):
        zt_ref = refs[0]
        seg_refs = refs[1:1 + L]
        wab_refs = refs[1 + L:1 + 2 * L]
        wn_refs = refs[1 + 2 * L:1 + 3 * L]
        bn_refs = refs[1 + 3 * L:1 + 4 * L]
        out_refs = refs[1 + 4 * L:]
        for li in range(L):
            nf = nfs[li]
            wab = wab_refs[li][...]        # (4*nf, C)  packed a|b weights
            wn = wn_refs[li][...]          # (2*nf, Zc)
            bn = bn_refs[li][...]          # (2*nf, 1)
            for n in range(N):
                seg = seg_refs[li][n]                                           # (C, P)
                zmap = jnp.dot(zt_ref[n], seg,
                               preferred_element_type=jnp.float32)              # (Zc, P)
                zaff = jnp.dot(wn, zmap, preferred_element_type=jnp.float32) + bn
                ab = jnp.dot(wab, seg, preferred_element_type=jnp.float32)      # (4*nf, P)
                actv = ab[:2 * nf] * zaff + ab[2 * nf:]
                out_refs[2 * li][n] = actv[:nf] + 1.0
                out_refs[2 * li + 1][n] = actv[nf:]

    out_shape = tuple(jax.ShapeDtypeStruct((N, nfs[li], Ps[li]), jnp.float32)
                      for li in range(L) for _ in range(2))
    args = ([zt] + list(seg_flat)
            + [l["wab"] for l in layers] + [l["wn"] for l in layers]
            + [l["bn"] for l in layers])
    outs = pl.pallas_call(kernel, out_shape=out_shape)(*args)

    res = []
    for li in range(L):
        _, _, H, W = shapes[li]
        res.append((outs[2 * li].reshape(N, nfs[li], H, W),
                    outs[2 * li + 1].reshape(N, nfs[li], H, W)))
    return res


# ----------------------------------------------------------------------------
# Parameter init (deterministic, gains folded, channel-major weights).
# Random raw weights are used (instead of the module's constant inits) so the
# numerical check exercises every datapath; the forward math is identical.
# ----------------------------------------------------------------------------
def init_modulator(key, mtype, semantic_nc, num_features, nhidden, z_channels, hw):
    C = semantic_nc
    nf = num_features
    if mtype == "CLADE":
        kg, kb = jax.random.split(key)
        wg = jax.random.normal(kg, (nf, C), jnp.float32) / np.sqrt(C)   # weight_gain = 1/sqrt(C)
        wb = jax.random.normal(kb, (nf, C), jnp.float32) / np.sqrt(C)
        return dict(type="CLADE", nf=nf, w=jnp.concatenate([wg, wb], axis=0))
    if mtype == "SPADE":
        k1, kb1, k2, kb2 = jax.random.split(key, 4)
        nh = nhidden
        w_conv = jax.random.normal(k1, (nh, C, 3, 3), jnp.float32) / np.sqrt(C * 9.0)
        b1 = 0.1 * jax.random.normal(kb1, (nh, 1), jnp.float32)
        w2 = jax.random.normal(k2, (2 * nf, nh), jnp.float32) / np.sqrt(nh)
        b2 = 0.1 * jax.random.normal(kb2, (2 * nf, 1), jnp.float32)
        w1 = jnp.transpose(w_conv, (2, 3, 0, 1)).reshape(9, nh, C)      # tap t = dy*3+dx
        one = jnp.concatenate([jnp.ones((nf, 1), jnp.float32),
                               jnp.zeros((nf, 1), jnp.float32)], axis=0)
        H, W = hw
        return dict(type="SPADE", nf=nf, nh=nh, hw=(H, W), w_conv=w_conv, w1=w1,
                    b1=b1, w2=w2, b2=b2, b2p=b2 + one, shift=make_shift_matrices(H, W))
    if mtype == "INADE":
        ka, kb, kn, kbn = jax.random.split(key, 4)
        wa = jax.random.normal(ka, (2 * nf, C), jnp.float32)                      # weight_gain = 1
        wb = jax.random.normal(kb, (2 * nf, C), jnp.float32) / np.sqrt(C)
        wn = jax.random.normal(kn, (2 * nf, z_channels), jnp.float32) / np.sqrt(z_channels)
        bn = 0.1 * jax.random.normal(kbn, (2 * nf, 1), jnp.float32)
        return dict(type="INADE", nf=nf, wab=jnp.concatenate([wa, wb], axis=0), wn=wn, bn=bn)
    raise ValueError(mtype)


def init_params(key):
    cfg = CONFIG

    def make(mtype, sizes, gkey):
        if mtype is None:
            return None
        keys = jax.random.split(gkey, len(sizes))
        return [init_modulator(k, mtype, cfg["semantic_nc"], s[0], cfg["nhidden"],
                               cfg["z_channels"], (s[1], s[2]))
                for k, s in zip(keys, sizes)]

    ke, km, kd = jax.random.split(key, 3)
    return dict(enc=make(cfg["encoder_modulator"], cfg["feature_sizes_enc"], ke),
                mid=make(cfg["middle_modulator"], cfg["feature_sizes_mid"], km),
                dec=make(cfg["decoder_modulator"], cfg["feature_sizes_dec"], kd))


# ----------------------------------------------------------------------------
# Pure-JAX reference (independent math path: lax.conv for SPADE, einsums elsewhere).
# ----------------------------------------------------------------------------
def reference_modulator(layer, seg_nchw, z):
    t, nf = layer["type"], layer["nf"]
    if t == "CLADE":
        actv = jnp.einsum("oc,nchw->nohw", layer["w"], seg_nchw, precision=_HI)
        return actv[:, :nf] + 1.0, actv[:, nf:]
    if t == "SPADE":
        h = jax.lax.conv_general_dilated(
            seg_nchw, layer["w_conv"], (1, 1), "SAME",
            dimension_numbers=("NCHW", "OIHW", "NCHW"), precision=_HI)
        h = h + layer["b1"].reshape(1, -1, 1, 1)
        h = jnp.where(h >= 0.0, h, LRELU_SLOPE * h) * LRELU_GAIN
        actv = (jnp.einsum("oc,nchw->nohw", layer["w2"], h, precision=_HI)
                + layer["b2"].reshape(1, -1, 1, 1))
        return actv[:, :nf] + 1.0, actv[:, nf:]
    if t == "INADE":
        zt = jnp.swapaxes(z, 1, 2)                                     # z.permute(0, 2, 1)
        zmap = jnp.einsum("ncl,nlhw->nchw", zt, seg_nchw, precision=_HI)
        zaff = (jnp.einsum("oc,nchw->nohw", layer["wn"], zmap, precision=_HI)
                + layer["bn"].reshape(1, -1, 1, 1))
        a = jnp.einsum("oc,nchw->nohw", layer["wab"][:2 * nf], seg_nchw, precision=_HI)
        b = jnp.einsum("oc,nchw->nohw", layer["wab"][2 * nf:], seg_nchw, precision=_HI)
        actv = a * zaff + b
        return actv[:, :nf] + 1.0, actv[:, nf:]
    raise ValueError(t)


# ----------------------------------------------------------------------------
# SemanticStyleEncoder.forward
# ----------------------------------------------------------------------------
def semantic_style_encoder_forward(params, semantic_mask, z, use_pallas=True):
    cfg = CONFIG
    modulation_params = []
    sm_ = semantic_mask

    def run_group(layers, segs):
        if not use_pallas:
            return [reference_modulator(l, s, z) for l, s in zip(layers, segs)]
        t = layers[0]["type"]
        if t == "CLADE":
            return clade_group(layers, segs)
        if t == "SPADE":
            return spade_group(layers, segs)
        return inade_group(layers, segs, z)

    # encoder
    if params["enc"] is not None:
        segs = []
        for shape in cfg["feature_sizes_enc"]:
            sm_ = nearest_resize_nchw(sm_, shape[1], shape[2])
            segs.append(sm_)
        for g, b in run_group(params["enc"], segs):
            modulation_params.append({"gamma": g, "beta": b})
    else:
        modulation_params.extend([{}] * len(cfg["feature_sizes_enc"]))

    # middle
    if params["mid"] is not None:
        segs = []
        for shape in cfg["feature_sizes_mid"]:
            sm_ = nearest_resize_nchw(sm_, shape[1], shape[2])
            segs.append(sm_)
        for g, b in run_group(params["mid"], segs):
            modulation_params.append({"gamma": g, "beta": b})
    else:
        modulation_params.extend([{}] * len(cfg["feature_sizes_mid"]))

    # decoder (always resizes from the original mask)
    segs = [nearest_resize_nchw(semantic_mask, shape[1], shape[2])
            for shape in cfg["feature_sizes_dec"]]
    for g, b in run_group(params["dec"], segs):
        modulation_params.append({"gamma": g, "beta": b})
    return modulation_params


# ----------------------------------------------------------------------------
if __name__ == "__main__":
    key = jax.random.PRNGKey(0)
    kmask, kz, kparams = jax.random.split(key, 3)

    N, C, H, W = 2, CONFIG["semantic_nc"], 16, 16
    semantic_mask = jax.nn.softmax(
        jax.random.normal(kmask, (N, C, H, W), jnp.float32), axis=1)
    z = jax.random.normal(kz, (N, C, CONFIG["z_channels"]), jnp.float32)

    params = init_params(kparams)

    out = semantic_style_encoder_forward(params, semantic_mask, z, use_pallas=True)
    out = jax.block_until_ready(out)

    # correctness check vs pure-JAX reference
    ref = semantic_style_encoder_forward(params, semantic_mask, z, use_pallas=False)
    for o, r in zip(out, ref):
        for name in ("gamma", "beta"):
            assert o[name].shape == r[name].shape, (o[name].shape, r[name].shape)
            assert jnp.allclose(o[name], r[name], atol=2e-3, rtol=2e-3), name

    print("KERNEL_OK")
</pallas_src>

<mosaic_0001>
module attributes {stable_mosaic.version = 11 : i64} {
  func.func @kernel(%arg0: memref<2x4x256xf32, #tpu.memory_space<vmem>>, %arg1: memref<2x4x64xf32, #tpu.memory_space<vmem>>, %arg2: memref<64x4xf32, #tpu.memory_space<vmem>>, %arg3: memref<64x4xf32, #tpu.memory_space<vmem>>, %arg4: memref<2x32x256xf32, #tpu.memory_space<vmem>>, %arg5: memref<2x32x256xf32, #tpu.memory_space<vmem>>, %arg6: memref<2x32x64xf32, #tpu.memory_space<vmem>>, %arg7: memref<2x32x64xf32, #tpu.memory_space<vmem>>) attributes {dimension_semantics = [], scalar_prefetch = 0 : i64, scratch_operands = 0 : i64, tpu.core_type = #tpu.core_type<tc>} {
    %c0 = arith.constant 0 : index
    %c0_0 = arith.constant 0 : index
    %0 = vector.load %arg2[%c0, %c0_0] : memref<64x4xf32, #tpu.memory_space<vmem>>, vector<64x4xf32>
    %c0_1 = arith.constant 0 : index
    %c0_2 = arith.constant 0 : index
    %c0_3 = arith.constant 0 : index
    %1 = vector.load %arg0[%c0_1, %c0_2, %c0_3] : memref<2x4x256xf32, #tpu.memory_space<vmem>>, vector<1x4x256xf32>
    %2 = vector.shape_cast %1 : vector<1x4x256xf32> to vector<4x256xf32>
    %cst = arith.constant dense<0.000000e+00> : vector<64x256xf32>
    %3 = tpu.matmul %0, %2, %cst {dimension_numbers = #tpu.dot_dimension_numbers<[1], [0], [0], [1], [0, 0, 1, 1], [], []>} : vector<64x4xf32>, vector<4x256xf32>, vector<64x256xf32> -> vector<64x256xf32>
    %4 = vector.extract_strided_slice %3 {offsets = [0, 0], sizes = [32, 256], strides = [1, 1]} : vector<64x256xf32> to vector<32x256xf32>
    %cst_4 = arith.constant 1.000000e+00 : f32
    %5 = vector.broadcast %cst_4 : f32 to vector<32x256xf32>
    %6 = arith.addf %4, %5 : vector<32x256xf32>
    %c0_5 = arith.constant 0 : index
    %c0_6 = arith.constant 0 : index
    %c0_7 = arith.constant 0 : index
    %7 = vector.load %arg4[%c0_5, %c0_6, %c0_7] : memref<2x32x256xf32, #tpu.memory_space<vmem>>, vector<1x32x256xf32>
    %8 = vector.shape_cast %7 : vector<1x32x256xf32> to vector<32x256xf32>
    %9 = vector.shape_cast %6 : vector<32x256xf32> to vector<1x32x256xf32>
    tpu.vector_store %arg4[%c0_5, %c0_6, %c0_7], %9 {strides = array<i32>} : memref<2x32x256xf32, #tpu.memory_space<vmem>>, vector<1x32x256xf32>,
    %10 = vector.extract_strided_slice %3 {offsets = [32, 0], sizes = [32, 256], strides = [1, 1]} : vector<64x256xf32> to vector<32x256xf32>
    %c0_8 = arith.constant 0 : index
    %c0_9 = arith.constant 0 : index
    %c0_10 = arith.constant 0 : index
    %11 = vector.load %arg5[%c0_8, %c0_9, %c0_10] : memref<2x32x256xf32, #tpu.memory_space<vmem>>, vector<1x32x256xf32>
    %12 = vector.shape_cast %11 : vector<1x32x256xf32> to vector<32x256xf32>
    %13 = vector.shape_cast %10 : vector<32x256xf32> to vector<1x32x256xf32>
    tpu.vector_store %arg5[%c0_8, %c0_9, %c0_10], %13 {strides = array<i32>} : memref<2x32x256xf32, #tpu.memory_space<vmem>>, vector<1x32x256xf32>,
    %c1 = arith.constant 1 : index
    %c0_11 = arith.constant 0 : index
    %c0_12 = arith.constant 0 : index
    %14 = vector.load %arg0[%c1, %c0_11, %c0_12] : memref<2x4x256xf32, #tpu.memory_space<vmem>>, vector<1x4x256xf32>
    %15 = vector.shape_cast %14 : vector<1x4x256xf32> to vector<4x256xf32>
    %cst_13 = arith.constant dense<0.000000e+00> : vector<64x256xf32>
    %16 = tpu.matmul %0, %15, %cst_13 {dimension_numbers = #tpu.dot_dimension_numbers<[1], [0], [0], [1], [0, 0, 1, 1], [], []>} : vector<64x4xf32>, vector<4x256xf32>, vector<64x256xf32> -> vector<64x256xf32>
    %17 = vector.extract_strided_slice %16 {offsets = [0, 0], sizes = [32, 256], strides = [1, 1]} : vector<64x256xf32> to vector<32x256xf32>
    %cst_14 = arith.constant 1.000000e+00 : f32
    %18 = vector.broadcast %cst_14 : f32 to vector<32x256xf32>
    %19 = arith.addf %17, %18 : vector<32x256xf32>
    %c1_15 = arith.constant 1 : index
    %c0_16 = arith.constant 0 : index
    %c0_17 = arith.constant 0 : index
    %20 = vector.load %arg4[%c1_15, %c0_16, %c0_17] : memref<2x32x256xf32, #tpu.memory_space<vmem>>, vector<1x32x256xf32>
    %21 = vector.shape_cast %20 : vector<1x32x256xf32> to vector<32x256xf32>
    %22 = vector.shape_cast %19 : vector<32x256xf32> to vector<1x32x256xf32>
    tpu.vector_store %arg4[%c1_15, %c0_16, %c0_17], %22 {strides = array<i32>} : memref<2x32x256xf32, #tpu.memory_space<vmem>>, vector<1x32x256xf32>,
    %23 = vector.extract_strided_slice %16 {offsets = [32, 0], sizes = [32, 256], strides = [1, 1]} : vector<64x256xf32> to vector<32x256xf32>
    %c1_18 = arith.constant 1 : index
    %c0_19 = arith.constant 0 : index
    %c0_20 = arith.constant 0 : index
    %24 = vector.load %arg5[%c1_18, %c0_19, %c0_20] : memref<2x32x256xf32, #tpu.memory_space<vmem>>, vector<1x32x256xf32>
    %25 = vector.shape_cast %24 : vector<1x32x256xf32> to vector<32x256xf32>
    %26 = vector.shape_cast %23 : vector<32x256xf32> to vector<1x32x256xf32>
    tpu.vector_store %arg5[%c1_18, %c0_19, %c0_20], %26 {strides = array<i32>} : memref<2x32x256xf32, #tpu.memory_space<vmem>>, vector<1x32x256xf32>,
    %c0_21 = arith.constant 0 : index
    %c0_22 = arith.constant 0 : index
    %27 = vector.load %arg3[%c0_21, %c0_22] : memref<64x4xf32, #tpu.memory_space<vmem>>, vector<64x4xf32>
    %c0_23 = arith.constant 0 : index
    %c0_24 = arith.constant 0 : index
    %c0_25 = arith.constant 0 : index
    %28 = vector.load %arg1[%c0_23, %c0_24, %c0_25] : memref<2x4x64xf32, #tpu.memory_space<vmem>>, vector<1x4x64xf32>
    %29 = vector.shape_cast %28 : vector<1x4x64xf32> to vector<4x64xf32>
    %cst_26 = arith.constant dense<0.000000e+00> : vector<64x64xf32>
    %30 = tpu.matmul %27, %29, %cst_26 {dimension_numbers = #tpu.dot_dimension_numbers<[1], [0], [0], [1], [0, 0, 1, 1], [], []>} : vector<64x4xf32>, vector<4x64xf32>, vector<64x64xf32> -> vector<64x64xf32>
    %31 = vector.extract_strided_slice %30 {offsets = [0, 0], sizes = [32, 64], strides = [1, 1]} : vector<64x64xf32> to vector<32x64xf32>
    %cst_27 = arith.constant 1.000000e+00 : f32
    %32 = vector.broadcast %cst_27 : f32 to vector<32x64xf32>
    %33 = arith.addf %31, %32 : vector<32x64xf32>
    %c0_28 = arith.constant 0 : index
    %c0_29 = arith.constant 0 : index
    %c0_30 = arith.constant 0 : index
    %34 = vector.load %arg6[%c0_28, %c0_29, %c0_30] : memref<2x32x64xf32, #tpu.memory_space<vmem>>, vector<1x32x64xf32>
    %35 = vector.shape_cast %34 : vector<1x32x64xf32> to vector<32x64xf32>
    %36 = vector.shape_cast %33 : vector<32x64xf32> to vector<1x32x64xf32>
    tpu.vector_store %arg6[%c0_28, %c0_29, %c0_30], %36 {strides = array<i32>} : memref<2x32x64xf32, #tpu.memory_space<vmem>>, vector<1x32x64xf32>,
    %37 = vector.extract_strided_slice %30 {offsets = [32, 0], sizes = [32, 64], strides = [1, 1]} : vector<64x64xf32> to vector<32x64xf32>
    %c0_31 = arith.constant 0 : index
    %c0_32 = arith.constant 0 : index
    %c0_33 = arith.constant 0 : index
    %38 = vector.load %arg7[%c0_31, %c0_32, %c0_33] : memref<2x32x64xf32, #tpu.memory_space<vmem>>, vector<1x32x64xf32>
    %39 = vector.shape_cast %38 : vector<1x32x64xf32> to vector<32x64xf32>
    %40 = vector.shape_cast %37 : vector<32x64xf32> to vector<1x32x64xf32>
    tpu.vector_store %arg7[%c0_31, %c0_32, %c0_33], %40 {strides = array<i32>} : memref<2x32x64xf32, #tpu.memory_space<vmem>>, vector<1x32x64xf32>,
    %c1_34 = arith.constant 1 : index
    %c0_35 = arith.constant 0 : index
    %c0_36 = arith.constant 0 : index
    %41 = vector.load %arg1[%c1_34, %c0_35, %c0_36] : memref<2x4x64xf32, #tpu.memory_space<vmem>>, vector<1x4x64xf32>
    %42 = vector.shape_cast %41 : vector<1x4x64xf32> to vector<4x64xf32>
    %cst_37 = arith.constant dense<0.000000e+00> : vector<64x64xf32>
    %43 = tpu.matmul %27, %42, %cst_37 {dimension_numbers = #tpu.dot_dimension_numbers<[1], [0], [0], [1], [0, 0, 1, 1], [], []>} : vector<64x4xf32>, vector<4x64xf32>, vector<64x64xf32> -> vector<64x64xf32>
    %44 = vector.extract_strided_slice %43 {offsets = [0, 0], sizes = [32, 64], strides = [1, 1]} : vector<64x64xf32> to vector<32x64xf32>
    %cst_38 = arith.constant 1.000000e+00 : f32
    %45 = vector.broadcast %cst_38 : f32 to vector<32x64xf32>
    %46 = arith.addf %44, %45 : vector<32x64xf32>
    %c1_39 = arith.constant 1 : index
    %c0_40 = arith.constant 0 : index
    %c0_41 = arith.constant 0 : index
    %47 = vector.load %arg6[%c1_39, %c0_40, %c0_41] : memref<2x32x64xf32, #tpu.memory_space<vmem>>, vector<1x32x64xf32>
    %48 = vector.shape_cast %47 : vector<1x32x64xf32> to vector<32x64xf32>
    %49 = vector.shape_cast %46 : vector<32x64xf32> to vector<1x32x64xf32>
    tpu.vector_store %arg6[%c1_39, %c0_40, %c0_41], %49 {strides = array<i32>} : memref<2x32x64xf32, #tpu.memory_space<vmem>>, vector<1x32x64xf32>,
    %50 = vector.extract_strided_slice %43 {offsets = [32, 0], sizes = [32, 64], strides = [1, 1]} : vector<64x64xf32> to vector<32x64xf32>
    %c1_42 = arith.constant 1 : index
    %c0_43 = arith.constant 0 : index
    %c0_44 = arith.constant 0 : index
    %51 = vector.load %arg7[%c1_42, %c0_43, %c0_44] : memref<2x32x64xf32, #tpu.memory_space<vmem>>, vector<1x32x64xf32>
    %52 = vector.shape_cast %51 : vector<1x32x64xf32> to vector<32x64xf32>
    %53 = vector.shape_cast %50 : vector<32x64xf32> to vector<1x32x64xf32>
    tpu.vector_store %arg7[%c1_42, %c0_43, %c0_44], %53 {strides = array<i32>} : memref<2x32x64xf32, #tpu.memory_space<vmem>>, vector<1x32x64xf32>,
    return
  }
}

</mosaic_0001>

<bundles_post_ra>
// kernel: tpu_custom_call.1
= control target key start
LH: loop header
LB: loop body
LE: loop exit
PB: predicated region body
PF: predicated region fallthrough
CT: control target
= control target key end

     0   :  { %13 = vsyncpa [#allocation3], 0  ;;  %s1107_s0 = inlined_call_operand.vmem [shape: f32[2,4,256], index: 0, kind: input, shape index: {}]   ;;  %s1108_s1 = inlined_call_operand.vmem [shape: f32[2,4,64], index: 1, kind: input, shape index: {}]   ;;  %s1109_s2 = inlined_call_operand.vmem [shape: f32[64,4], index: 2, kind: input, shape index: {}]   ;;  %s1110_s3 = inlined_call_operand.vmem [shape: f32[64,4], index: 3, kind: input, shape index: {}]   ;;  %s1111_s4 = inlined_call_operand.hbm [shape: f32[2,32,256], index: 4, kind: output, shape index: {0}]   ;;  %s1112_s5 = inlined_call_operand.hbm [shape: f32[2,32,256], index: 5, kind: output, shape index: {1}]   ;;  %s1113_s6 = inlined_call_operand.hbm [shape: f32[2,32,64], index: 6, kind: output, shape index: {2}]   ;;  %s1114_s7 = inlined_call_operand.hbm [shape: f32[2,32,64], index: 7, kind: output, shape index: {3}]  }
   0x1   :  { %14 = vsyncpa [#allocation5], 0  ;;  %v32_v0 = vld [vmem:[%s1107_s0] sm:$0xff]  ;;  %vm60_vm0 = vcmask 1043456   ;;  %v700_v1 = vld [vmem:[%s1107_s0 + $0x8] sm:$0xff]  ;;  %v881_v4 = vmov 0.0  }
   0x2   :  { %v34_v2 = vcombine.high %v32_v0, %v32_v0  ;;  %v205_v3 = vcombine.high %v700_v1, %v700_v1  ;;  %129 = vmatprep.mubr.f32.mxu0 %v881_v4  ;;  %274 = vmatprep.mubr.f32.mxu1 %v881_v4  ;;  %v24_v5 = vld [vmem:[%s1109_s2] sm:$0xff]  ;;  %vm35_vm1 = vcmask 31744   ;;  %v25_v8 = vld [vmem:[%s1109_s2 + $0x8] sm:$0xff] }
   0x3   :  { %v357_v6 = vld [vmem:[%s1108_s1] sm:$0xf]  ;;  %v720_v7 = vld [vmem:[%s1108_s1 + $0x4] sm:$0xf] }
   0x4   :  { %690 = vmatprep.subr.msk.mxu0 %vm60_vm0, %v34_v2  ;;  %701 = vmatprep.subr.msk.mxu1 %vm60_vm0, %v205_v3 }
   0x5   :  { %691 = vmatpush1.msk.msra.mxu0 %vm60_vm0, %v32_v0  ;;  %702 = vmatpush1.msk.msra.mxu1 %vm60_vm0, %v700_v1 }
   0x6   :  { %692 = vmatmul.mubr.msk.f32.vlgmr.msra.gmra.mrb[0].mxu0 %vm35_vm1, %v24_v5  ;;  %703 = vmatmul.mubr.msk.f32.vlgmr.msra.gmra.mrb[0].mxu1 %vm35_vm1, %v24_v5 }
   0x7   :  { %748 = vmatprep.subr.msk.mxu0 %vm60_vm0, %v357_v6  ;;  %762 = vmatprep.subr.msk.mxu1 %vm60_vm0, %v720_v7 }
   0x8   :  { %15 = vsyncpa [#allocation8], 0  ;;  %749 = vmatpush3.msk.msra.mxu0 %vm60_vm0, %v357_v6  ;;  %763 = vmatpush3.msk.msra.mxu1 %vm60_vm0, %v720_v7  ;;  %v26_v9 = vld [vmem:[%s1109_s2 + $0x10] sm:$0xff]  ;;  %v27_v10 = vld [vmem:[%s1109_s2 + $0x18] sm:$0xff] }
   0x9   :  { %135 = vmatprep.mubr.f32.mxu0 %v881_v4  ;;  %280 = vmatprep.mubr.f32.mxu1 %v881_v4  ;;  %v28_v11 = vld [vmem:[%s1109_s2 + $0x20] sm:$0xff]  ;;  %v29_v12 = vld [vmem:[%s1109_s2 + $0x28] sm:$0xff]  ;;  %v30_v13 = vld [vmem:[%s1109_s2 + $0x30] sm:$0xff] }
   0xa   :  { %693 = vmatmul.mubr.msk.f32.gmra.mrb[2].mxu0 %vm35_vm1, %v25_v8  ;;  %704 = vmatmul.mubr.msk.f32.gmra.mrb[2].mxu1 %vm35_vm1, %v25_v8  ;;  %v31_v14 = vld [vmem:[%s1109_s2 + $0x38] sm:$0xff]  ;;  %v349_v15 = vld [vmem:[%s1110_s3] sm:$0xff]  ;;  %v350_v16 = vld [vmem:[%s1110_s3 + $0x8] sm:$0xff] }
   0xb   :  { %141 = vmatprep.mubr.f32.mxu0 %v881_v4  ;;  %286 = vmatprep.mubr.f32.mxu1 %v881_v4  ;;  %v351_v17 = vld [vmem:[%s1110_s3 + $0x10] sm:$0xff]  ;;  %v352_v18 = vld [vmem:[%s1110_s3 + $0x18] sm:$0xff]  ;;  %v353_v19 = vld [vmem:[%s1110_s3 + $0x20] sm:$0xff] }
   0xc   :  { %v354_v20 = vld [vmem:[%s1110_s3 + $0x28] sm:$0xff]  ;;  %v355_v21 = vld [vmem:[%s1110_s3 + $0x30] sm:$0xff]  ;;  %v356_v22 = vld [vmem:[%s1110_s3 + $0x38] sm:$0xff]  ;;  %s882_s3 = smov [#allocation2]  }
   0xd   :  { %s632_s13 = sshll.u32 %s882_s3, 4  ;;  %s633_s13 = int_to_ptr.vmem [resolvable:$true] %s632_s13 }
   0xe   :  { %694 = vmatmul.mubr.msk.f32.gmra.mrb[4].mxu0 %vm35_vm1, %v26_v9  ;;  %705 = vmatmul.mubr.msk.f32.gmra.mrb[4].mxu1 %vm35_vm1, %v26_v9  ;;  %s787_s14 = scalar_lea.vmem %s633_s13, 2048  ;;  %p792_p1 = scmp.lt.s32.totalorder %s633_s13, %s633_s13 }
   0xf   :  { %147 = vmatprep.mubr.f32.mxu0 %v881_v4  ;;  %292 = vmatprep.mubr.f32.mxu1 %v881_v4  ;;  %p788_p0 = scmp.ne.s32.totalorder %s633_s13, %s787_s14  ;;  %p793_p2 = scmp.lt.s32.totalorder %s787_s14, %s787_s14 }
  0x11   :  { %p794_p3 = por %p793_p2, %p792_p1 }
  0x12   :  { %695 = vmatmul.mubr.msk.f32.gmra.mrb[6].mxu0 %vm35_vm1, %v27_v10  ;;  %706 = vmatmul.mubr.msk.f32.gmra.mrb[6].mxu1 %vm35_vm1, %v27_v10 }
  0x13   :  { %153 = vmatprep.mubr.f32.mxu0 %v881_v4  ;;  %298 = vmatprep.mubr.f32.mxu1 %v881_v4  ;;  %p795_p4 = pnand %p794_p3, %p788_p0 }
  0x16   :  { %696 = vmatmul.mubr.msk.f32.gmra.mrb[8].mxu0 %vm35_vm1, %v28_v11  ;;  %707 = vmatmul.mubr.msk.f32.gmra.mrb[8].mxu1 %vm35_vm1, %v28_v11 }
  0x17   :  { %159 = vmatprep.mubr.f32.mxu0 %v881_v4  ;;  %304 = vmatprep.mubr.f32.mxu1 %v881_v4 }
  0x1a   :  { %697 = vmatmul.mubr.msk.f32.gmra.mrb[10].mxu0 %vm35_vm1, %v29_v12  ;;  %708 = vmatmul.mubr.msk.f32.gmra.mrb[10].mxu1 %vm35_vm1, %v29_v12 }
  0x1b   :  { %165 = vmatprep.mubr.f32.mxu0 %v881_v4  ;;  %310 = vmatprep.mubr.f32.mxu1 %v881_v4 }
  0x1e   :  { %698 = vmatmul.mubr.msk.f32.gmra.mrb[12].mxu0 %vm35_vm1, %v30_v13  ;;  %709 = vmatmul.mubr.msk.f32.gmra.mrb[12].mxu1 %vm35_vm1, %v30_v13 }
  0x1f   :  { %171 = vmatprep.mubr.f32.mxu0 %v881_v4  ;;  %316 = vmatprep.mubr.f32.mxu1 %v881_v4 }
  0x22   :  { %699 = vmatmul.mubr.msk.f32.gmra.mrb[14].mxu0 %vm35_vm1, %v31_v14  ;;  %710 = vmatmul.mubr.msk.f32.gmra.mrb[14].mxu1 %vm35_vm1, %v31_v14 }
  0x23   :  { %750 = vmatprep.mubr.msk.f32.mxu0 %vm35_vm1, %v349_v15  ;;  %764 = vmatprep.mubr.msk.f32.mxu1 %vm35_vm1, %v349_v15 }
  0x26   :  { %751 = vmatmul.mubr.msk.f32.vlgmr.msra.gmra.mrb[16].mxu0 %vm35_vm1, %v350_v16  ;;  %765 = vmatmul.mubr.msk.f32.vlgmr.msra.gmra.mrb[16].mxu1 %vm35_vm1, %v350_v16 }
  0x27   :  { %753 = vmatprep.mubr.msk.f32.mxu0 %vm35_vm1, %v351_v17  ;;  %767 = vmatprep.mubr.msk.f32.mxu1 %vm35_vm1, %v351_v17 }
  0x2a   :  { %754 = vmatmul.mubr.msk.f32.gmra.mrb[18].mxu0 %vm35_vm1, %v352_v18  ;;  %768 = vmatmul.mubr.msk.f32.gmra.mrb[18].mxu1 %vm35_vm1, %v352_v18 }
  0x2b   :  { %756 = vmatprep.mubr.msk.f32.mxu0 %vm35_vm1, %v353_v19  ;;  %770 = vmatprep.mubr.msk.f32.mxu1 %vm35_vm1, %v353_v19 }
  0x2e   :  { %757 = vmatmul.mubr.msk.f32.gmra.mrb[20].mxu0 %vm35_vm1, %v354_v20  ;;  %771 = vmatmul.mubr.msk.f32.gmra.mrb[20].mxu1 %vm35_vm1, %v354_v20 }
  0x2f   :  { %759 = vmatprep.mubr.msk.f32.mxu0 %vm35_vm1, %v355_v21  ;;  %773 = vmatprep.mubr.msk.f32.mxu1 %vm35_vm1, %v355_v21 }
  0x32   :  { %760 = vmatmul.mubr.msk.f32.gmra.mrb[22].mxu0 %vm35_vm1, %v356_v22  ;;  %774 = vmatmul.mubr.msk.f32.gmra.mrb[22].mxu1 %vm35_vm1, %v356_v22 }
  0xd9   :  { %v131_v23 = vpop.f32.mrb[0].mxu0  ;;  %v276_v24 = vpop.f32.mrb[0].mxu1 }
  0xda   :  { %v178_v25 = vadd.f32 1.0, %v131_v23  ;;  %v323_v26 = vadd.f32 1.0, %v276_v24  ;;  %v133_v27 = vpop.f32.mrb[1].mxu0  ;;  %v278_v28 = vpop.f32.mrb[1].mxu1 }
  0xdb   :  { %v179_v29 = vadd.f32 1.0, %v133_v27  ;;  %v324_v30 = vadd.f32 1.0, %v278_v28 }
  0xdc   :  { %186 = vst [vmem:[#allocation2] sm:$0xff] %v178_v25  ;;  %332 = vst [vmem:[#allocation2 + $0x40] sm:$0xff] %v323_v26 }
  0xdd   :  { %187 = vst [vmem:[#allocation2 + $0x8] sm:$0xff] %v179_v29  ;;  %333 = vst [vmem:[#allocation2 + $0x48] sm:$0xff] %v324_v30  ;;  %v137_v31 = vpop.f32.mrb[2].mxu0  ;;  %v282_v32 = vpop.f32.mrb[2].mxu1 }
  0xde   :  { %v180_v33 = vadd.f32 1.0, %v137_v31  ;;  %v325_v34 = vadd.f32 1.0, %v282_v32  ;;  %v139_v35 = vpop.f32.mrb[3].mxu0  ;;  %v284_v36 = vpop.f32.mrb[3].mxu1 }
  0xdf   :  { %v181_v37 = vadd.f32 1.0, %v139_v35  ;;  %v326_v38 = vadd.f32 1.0, %v284_v36 }
  0xe0   :  { %188 = vst [vmem:[#allocation2 + $0x10] sm:$0xff] %v180_v33  ;;  %334 = vst [vmem:[#allocation2 + $0x50] sm:$0xff] %v325_v34 }
  0xe1   :  { %189 = vst [vmem:[#allocation2 + $0x18] sm:$0xff] %v181_v37  ;;  %335 = vst [vmem:[#allocation2 + $0x58] sm:$0xff] %v326_v38  ;;  %v143_v39 = vpop.f32.mrb[4].mxu0  ;;  %v288_v40 = vpop.f32.mrb[4].mxu1 }
  0xe2   :  { %v182_v41 = vadd.f32 1.0, %v143_v39  ;;  %v327_v42 = vadd.f32 1.0, %v288_v40  ;;  %v145_v43 = vpop.f32.mrb[5].mxu0  ;;  %v290_v44 = vpop.f32.mrb[5].mxu1 }
  0xe3   :  { %v183_v45 = vadd.f32 1.0, %v145_v43  ;;  %v328_v46 = vadd.f32 1.0, %v290_v44 }
  0xe4   :  { %190 = vst [vmem:[#allocation2 + $0x20] sm:$0xff] %v182_v41  ;;  %336 = vst [vmem:[#allocation2 + $0x60] sm:$0xff] %v327_v42 }
  0xe5   :  { %191 = vst [vmem:[#allocation2 + $0x28] sm:$0xff] %v183_v45  ;;  %337 = vst [vmem:[#allocation2 + $0x68] sm:$0xff] %v328_v46  ;;  %v149_v47 = vpop.f32.mrb[6].mxu0  ;;  %v294_v48 = vpop.f32.mrb[6].mxu1 }
  0xe6   :  { %v184_v49 = vadd.f32 1.0, %v149_v47  ;;  %v329_v50 = vadd.f32 1.0, %v294_v48  ;;  %v151_v51 = vpop.f32.mrb[7].mxu0  ;;  %v296_v52 = vpop.f32.mrb[7].mxu1 }
  0xe7   :  { %v185_v53 = vadd.f32 1.0, %v151_v51  ;;  %v330_v54 = vadd.f32 1.0, %v296_v52 }
  0xe8   :  { %192 = vst [vmem:[#allocation2 + $0x30] sm:$0xff] %v184_v49  ;;  %338 = vst [vmem:[#allocation2 + $0x70] sm:$0xff] %v329_v50 }
  0xe9   :  { %193 = vst [vmem:[#allocation2 + $0x38] sm:$0xff] %v185_v53  ;;  %339 = vst [vmem:[#allocation2 + $0x78] sm:$0xff] %v330_v54  ;;  %v155_v55 = vpop.f32.mrb[8].mxu0  ;;  %v300_v56 = vpop.f32.mrb[8].mxu1 }
  0xea   :  { %194 = vst [vmem:[#allocation4] sm:$0xff] %v155_v55  ;;  %341 = vst [vmem:[#allocation4 + $0x40] sm:$0xff] %v300_v56  ;;  %v157_v57 = vpop.f32.mrb[9].mxu0  ;;  %v302_v58 = vpop.f32.mrb[9].mxu1 }
  0xeb   :  { %798 = shalt.err (!%p795_p4)
}
  0xec   :  { %s799_s17 = scalar_lea.hbm %s1111_s4, 2048 }
  0xed   :  { %p800_p5 = scmp.ne.s32.totalorder %s1111_s4, %s799_s17  ;;  %p803_p6 = scmp.lt.u32.totalorder %s799_s17, %s1111_s4 }
  0xef   :  { %p805_p7 = pnand %p803_p6, %p800_p5 }
  0xf1   :  { %808 = shalt.err (!%p805_p7)
}
  0xf2   :  { %s883_s22 = smov 256   ;;  %s884_s23 = smov 16   ;;  %195 = vst [vmem:[#allocation4 + $0x8] sm:$0xff] %v157_v57  ;;  %342 = vst [vmem:[#allocation4 + $0x48] sm:$0xff] %v302_v58  ;;  %v161_v59 = vpop.f32.mrb[10].mxu0  ;;  %v306_v60 = vpop.f32.mrb[10].mxu1 }
  0xf3   :  { %638 = dma.vmem_to_hbm [thread:$0]  %s633_s13, 2048, %s1111_s4, [#allocation3], %s883_s22, %s883_s22, %s884_s23   ;;  %196 = vst [vmem:[#allocation4 + $0x10] sm:$0xff] %v161_v59  ;;  %343 = vst [vmem:[#allocation4 + $0x50] sm:$0xff] %v306_v60  ;;  %v163_v61 = vpop.f32.mrb[11].mxu0  ;;  %v308_v62 = vpop.f32.mrb[11].mxu1 }
  0xf4   :  { %197 = vst [vmem:[#allocation4 + $0x18] sm:$0xff] %v163_v61  ;;  %344 = vst [vmem:[#allocation4 + $0x58] sm:$0xff] %v308_v62  ;;  %v167_v63 = vpop.f32.mrb[12].mxu0  ;;  %v312_v0 = vpop.f32.mrb[12].mxu1  ;;  %s885_s26 = smov [#allocation4]  }
  0xf5   :  { %198 = vst [vmem:[#allocation4 + $0x20] sm:$0xff] %v167_v63  ;;  %345 = vst [vmem:[#allocation4 + $0x60] sm:$0xff] %v312_v0  ;;  %v169_v1 = vpop.f32.mrb[13].mxu0  ;;  %v314_v2 = vpop.f32.mrb[13].mxu1  ;;  %s644_s27 = sshll.u32 %s885_s26, 4  ;;  %s645_s27 = int_to_ptr.vmem [resolvable:$true] %s644_s27 }
  0xf6   :  { %199 = vst [vmem:[#allocation4 + $0x28] sm:$0xff] %v169_v1  ;;  %346 = vst [vmem:[#allocation4 + $0x68] sm:$0xff] %v314_v2  ;;  %v173_v3 = vpop.f32.mrb[14].mxu0  ;;  %v318_v4 = vpop.f32.mrb[14].mxu1  ;;  %s809_s4 = scalar_lea.vmem %s645_s27, 2048  ;;  %p814_p9 = scmp.lt.s32.totalorder %s645_s27, %s645_s27 }
  0xf7   :  { %200 = vst [vmem:[#allocation4 + $0x30] sm:$0xff] %v173_v3  ;;  %347 = vst [vmem:[#allocation4 + $0x70] sm:$0xff] %v318_v4  ;;  %v175_v5 = vpop.f32.mrb[15].mxu0  ;;  %v320_v6 = vpop.f32.mrb[15].mxu1  ;;  %p810_p8 = scmp.ne.s32.totalorder %s645_s27, %s809_s4  ;;  %p815_p10 = scmp.lt.s32.totalorder %s809_s4, %s809_s4 }
  0xf8   :  { %201 = vst [vmem:[#allocation4 + $0x38] sm:$0xff] %v175_v5  ;;  %348 = vst [vmem:[#allocation4 + $0x78] sm:$0xff] %v320_v6 }
  0xf9   :  { %p816_p11 = por %p815_p10, %p814_p9 }
  0xfb   :  { %p817_p12 = pnand %p816_p11, %p810_p8 }
  0xfd   :  { %820 = shalt.err (!%p817_p12)
}
  0xfe   :  { %s821_s29 = scalar_lea.hbm %s1112_s5, 2048 }
  0xff   :  { %p822_p13 = scmp.ne.s32.totalorder %s1112_s5, %s821_s29  ;;  %p825_p0 = scmp.lt.u32.totalorder %s821_s29, %s1112_s5 }
 0x101   :  { %p827_p1 = pnand %p825_p0, %p822_p13 }
 0x103   :  { %830 = shalt.err (!%p827_p1)
}
 0x104   :  { %650 = dma.vmem_to_hbm [thread:$0]  %s645_s27, 2048, %s1112_s5, [#allocation5], %s883_s22, %s883_s22, %s884_s23   ;;  %v752_v7 = vpop.f32.mrb[16].mxu0  ;;  %vm494_vm2 = vcmask 523264   ;;  %v766_v8 = vpop.f32.mrb[16].mxu1 }
 0x105   :  { %v491_v9 = vadd.f32 1.0, %v752_v7  ;;  %v614_v10 = vadd.f32 1.0, %v766_v8  ;;  %v451_v11 = vpop.f32.mrb[17].mxu0  ;;  %v574_v12 = vpop.f32.mrb[17].mxu1  ;;  %s886_s1 = smov [#allocation6]   ;;  %s887_s5 = smov [#allocation7]  }
 0x106   :  { %v490_v13 = vadd.f32 1.0, %v451_v11  ;;  %v613_v14 = vadd.f32 1.0, %v574_v12  ;;  %s656_s12 = sshll.u32 %s886_s1, 4  ;;  %v755_v15 = vpop.f32.mrb[18].mxu0  ;;  %v769_v16 = vpop.f32.mrb[18].mxu1  ;;  %s668_s3 = sshll.u32 %s887_s5, 4  ;;  %s1064_s12 = int_to_ptr.vmem [resolvable:$true] %s656_s12  ;;  %s669_s3 = int_to_ptr.vmem [resolvable:$true] %s668_s3 }
 0x107   :  { %496 = vst.msk [vmem:[#allocation6 + $0x8] sm:$0xff] %vm494_vm2, %v491_v9  ;;  %619 = vst.msk [vmem:[#allocation6 + $0x28] sm:$0xff] %vm494_vm2, %v614_v10  ;;  %v493_v17 = vadd.f32 1.0, %v755_v15  ;;  %v616_v18 = vadd.f32 1.0, %v769_v16  ;;  %v461_v19 = vpop.f32.mrb[19].mxu0  ;;  %v584_v20 = vpop.f32.mrb[19].mxu1  ;;  %p836_p3 = scmp.lt.s32.totalorder %s1064_s12, %s1064_s12 }
 0x108   :  { %495 = vst.msk [vmem:[#allocation6] sm:$0xff] %vm494_vm2, %v490_v13  ;;  %618 = vst.msk [vmem:[#allocation6 + $0x20] sm:$0xff] %vm494_vm2, %v613_v14  ;;  %v492_v21 = vadd.f32 1.0, %v461_v19  ;;  %v615_v22 = vadd.f32 1.0, %v584_v20  ;;  %v758_v23 = vpop.f32.mrb[20].mxu0  ;;  %v772_v24 = vpop.f32.mrb[20].mxu1 }
 0x109   :  { %498 = vst.msk [vmem:[#allocation6 + $0x18] sm:$0xff] %vm494_vm2, %v493_v17  ;;  %621 = vst.msk [vmem:[#allocation6 + $0x38] sm:$0xff] %vm494_vm2, %v616_v18  ;;  %v471_v25 = vpop.f32.mrb[21].mxu0  ;;  %v594_v26 = vpop.f32.mrb[21].mxu1  ;;  %s831_s13 = scalar_lea.vmem %s1064_s12, 1024 }
 0x10a   :  { %497 = vst.msk [vmem:[#allocation6 + $0x10] sm:$0xff] %vm494_vm2, %v492_v21  ;;  %620 = vst.msk [vmem:[#allocation6 + $0x30] sm:$0xff] %vm494_vm2, %v615_v22  ;;  %p832_p2 = scmp.ne.s32.totalorder %s1064_s12, %s831_s13  ;;  %p837_p4 = scmp.lt.s32.totalorder %s831_s13, %s831_s13 }
 0x10b   :  { %500 = vst.msk [vmem:[#allocation7 + $0x8] sm:$0xff] %vm494_vm2, %v758_v23  ;;  %624 = vst.msk [vmem:[#allocation7 + $0x28] sm:$0xff] %vm494_vm2, %v772_v24 }
 0x10c   :  { %p838_p5 = por %p837_p4, %p836_p3 }
 0x10e   :  { %p839_p6 = pnand %p838_p5, %p832_p2 }
 0x110   :  { %842 = shalt.err (!%p839_p6)
}
 0x111   :  { %s843_s16 = scalar_lea.hbm %s1113_s6, 1024 }
 0x112   :  { %p844_p7 = scmp.ne.s32.totalorder %s1113_s6, %s843_s16  ;;  %p847_p8 = scmp.lt.u32.totalorder %s843_s16, %s1113_s6 }
 0x114   :  { %p849_p9 = pnand %p847_p8, %p844_p7 }
 0x116   :  { %852 = shalt.err (!%p849_p9)
}
 0x117   :  { %s888_s21 = smov 128   ;;  %s889_s22 = smov 8   ;;  %499 = vst.msk [vmem:[#allocation7] sm:$0xff] %vm494_vm2, %v471_v25  ;;  %623 = vst.msk [vmem:[#allocation7 + $0x20] sm:$0xff] %vm494_vm2, %v594_v26  ;;  %v761_v27 = vpop.f32.mrb[22].mxu0  ;;  %v775_v28 = vpop.f32.mrb[22].mxu1 }
 0x118   :  { %662 = dma.vmem_to_hbm [thread:$0]  %s1064_s12, 1024, %s1113_s6, [#allocation5], %s888_s21, %s888_s21, %s889_s22   ;;  %502 = vst.msk [vmem:[#allocation7 + $0x18] sm:$0xff] %vm494_vm2, %v761_v27  ;;  %626 = vst.msk [vmem:[#allocation7 + $0x38] sm:$0xff] %vm494_vm2, %v775_v28  ;;  %v481_v29 = vpop.f32.mrb[23].mxu0  ;;  %v604_v30 = vpop.f32.mrb[23].mxu1 }
 0x119   :  { %501 = vst.msk [vmem:[#allocation7 + $0x10] sm:$0xff] %vm494_vm2, %v481_v29  ;;  %625 = vst.msk [vmem:[#allocation7 + $0x30] sm:$0xff] %vm494_vm2, %v604_v30  ;;  %s853_s25 = scalar_lea.vmem %s669_s3, 1024  ;;  %p858_p11 = scmp.lt.s32.totalorder %s669_s3, %s669_s3 }
 0x11a   :  { %p854_p10 = scmp.ne.s32.totalorder %s669_s3, %s853_s25  ;;  %p859_p12 = scmp.lt.s32.totalorder %s853_s25, %s853_s25 }
 0x11c   :  { %p860_p13 = por %p859_p12, %p858_p11 }
 0x11e   :  { %p861_p0 = pnand %p860_p13, %p854_p10 }
 0x120   :  { %864 = shalt.err (!%p861_p0)
}
 0x121   :  { %s865_s27 = scalar_lea.hbm %s1114_s7, 1024 }
 0x122   :  { %p866_p1 = scmp.ne.s32.totalorder %s1114_s7, %s865_s27  ;;  %p869_p2 = scmp.lt.u32.totalorder %s865_s27, %s1114_s7 }
 0x124   :  { %p871_p3 = pnand %p869_p2, %p866_p1 }
 0x126   :  { %874 = shalt.err (!%p871_p3)
}
 0x127   :  { %674 = dma.vmem_to_hbm [thread:$0]  %s669_s3, 1024, %s1114_s7, [#allocation8], %s888_s21, %s888_s21, %s889_s22  }
 0x128   :  { %875 = dma.done.wait [#allocation3], 2048  }
 0x129   :  { %876 = vsyncadd [#allocation3], 4294965248 }
 0x12a   :  { %877 = dma.done.wait [#allocation5], 3072  }
 0x12b   :  { %878 = vsyncadd [#allocation5], 4294964224 }
 0x12c   :  { %879 = dma.done.wait [#allocation8], 1024  }
 0x12d   :  { %880 = vsyncadd [#allocation8], 4294966272 }
 0x12e   :  { %687 = vsyncpa [#allocation3], 1 }
 0x12f   :  { %688 = vsyncpa [#allocation5], 1 }
 0x130   :  { %689 = vsyncpa [#allocation8], 1 }

</bundles_post_ra>
